<compile_context>
chip_gen: v6e
topology: v6e:2x2x1
jax: 0.10.0
libtpu: 0.0.40
codegen_flags: <defaults>
</compile_context>

<pallas_src>
import functools

import jax
import jax.numpy as jnp
from jax import lax
from jax.experimental import pallas as pl
from jax.experimental.pallas import tpu as pltpu


def _binary_head_kernel(x_ref, w_ref, b_ref, o_ref, *, s):
    # x_ref: (TILE_B, E), w_ref: (E, Cp), b_ref: (1, Cp) [already s*bias],
    # o_ref: (TILE_B, Cp)
    x = x_ref[...].astype(jnp.float32)

    # Row-wise sum of squares (XLU reduce).  Folding the normalization into the
    # small (TILE_B, Cp) epilogue uses (x/||x||) @ W == (x @ W) / ||x||.
    sumsq = jnp.sum(x * x, axis=1, keepdims=True)             # (TILE_B, 1) f32
    inv_norm_s = lax.rsqrt(sumsq) * s                         # EUP rsqrt + tiny VPU mul

    logits = jnp.dot(x, w_ref[...],                           # MXU, f32 accumulate
                     preferred_element_type=jnp.float32)      # (TILE_B, Cp)

    # out = s * ((x/||x||) @ W + bias) == logits * (s*rsqrt) + (s*bias)
    o_ref[...] = (logits * inv_norm_s + b_ref[...]).astype(o_ref.dtype)


def binary_head(fea, weight, bias, s=16.0, *, tile_b_max=512):
    """fea: (B, E); weight: (C, E) as in nn.Linear; bias: (C,). Returns (B, C) f32."""
    B, E = fea.shape
    C = weight.shape[0]

    # ---- wrapper-side layout plumbing (O(params), one-time) -----------------
    # Lane-dense output: pad class dim up to a multiple of 128.
    Cp = max(128, ((C + 127) // 128) * 128)
    w_t = jnp.zeros((E, Cp), dtype=jnp.float32).at[:, :C].set(
        weight.T.astype(jnp.float32))
    b2 = jnp.zeros((1, Cp), dtype=jnp.float32).at[:, :C].set(
        (bias.astype(jnp.float32) * s).reshape(1, C))         # pre-scale by s

    # Batch tiling: pad B to a sublane multiple, pick a tile, pad to the tile.
    B8 = ((B + 7) // 8) * 8
    tile_b = min(tile_b_max, B8)
    Bp = ((B8 + tile_b - 1) // tile_b) * tile_b
    x = fea.astype(jnp.float32)
    if Bp != B:
        # Pad with ones so padded rows have a finite norm (sliced away below).
        x = jnp.pad(x, ((0, Bp - B), (0, 0)), constant_values=1.0)

    grid = (Bp // tile_b,)
    kernel = functools.partial(_binary_head_kernel, s=float(s))

    # VMEM budget: x (double-buffered) + W (resident) + bias + out
    # (double-buffered), plus 2x headroom; safe for v7x's smaller scoped VMEM.
    vmem_bytes = (2 * tile_b * E * 4) + (E * Cp * 4) + (Cp * 4) \
                 + (2 * tile_b * Cp * 4)
    vmem_limit = int(min(max(2 * vmem_bytes, 8 << 20), 96 << 20))

    cost = pl.CostEstimate(
        flops=2 * Bp * E * Cp + 3 * Bp * E + 2 * Bp * Cp,
        transcendentals=Bp,
        bytes_accessed=4 * (Bp * E + E * Cp + Cp + Bp * Cp),
    )

    out = pl.pallas_call(
        kernel,
        out_shape=jax.ShapeDtypeStruct((Bp, Cp), jnp.float32),
        grid=grid,
        in_specs=[
            pl.BlockSpec((tile_b, E), lambda i: (i, 0)),   # x: tiled over batch
            pl.BlockSpec((E, Cp), lambda i: (0, 0)),       # W^T: VMEM-resident
            pl.BlockSpec((1, Cp), lambda i: (0, 0)),       # s*bias: VMEM-resident
        ],
        out_specs=pl.BlockSpec((tile_b, Cp), lambda i: (i, 0)),
        compiler_params=pltpu.CompilerParams(
            dimension_semantics=("parallel",),
            vmem_limit_bytes=vmem_limit,
        ),
        cost_estimate=cost,
    )(x, w_t, b2)

    return out[:B, :C]


if __name__ == "__main__":
    # Small shapes consistent with the module: batch=8, emb_size=256, num_class=2
    B, E, C = 8, 256, 2
    s = 16.0

    key = jax.random.PRNGKey(0)
    k_fea, k_w, k_b = jax.random.split(key, 3)

    fea = jax.random.normal(k_fea, (B, E), dtype=jnp.float32)
    # Deterministic synthetic params (shapes match nn.Linear(emb_size, num_class))
    weight = jax.random.normal(k_w, (C, E), dtype=jnp.float32) * 0.02
    bias = jax.random.normal(k_b, (C,), dtype=jnp.float32) * 0.02

    out = binary_head(fea, weight, bias, s=s)
    out = jax.block_until_ready(out)

    # Pure-JAX reference of the original torch semantics.
    norm = jnp.linalg.norm(fea, ord=2, axis=1, keepdims=True)
    ref = ((fea / norm) @ weight.T + bias) * s
    assert out.shape == (B, C)
    assert jnp.allclose(out, ref, atol=1e-4, rtol=1e-4), "mismatch vs reference"

    print("KERNEL_OK")
</pallas_src>

<mosaic_0001>
module attributes {stable_mosaic.version = 11 : i64} {
  func.func @_binary_head_kernel(%arg0: i32, %arg1: memref<8x256xf32, #tpu.memory_space<vmem>>, %arg2: memref<256x128xf32, #tpu.memory_space<vmem>>, %arg3: memref<1x128xf32, #tpu.memory_space<vmem>>, %arg4: memref<8x128xf32, #tpu.memory_space<vmem>>) attributes {dimension_semantics = [#tpu.dimension_semantics<parallel>], iteration_bounds = array<i64: 1>, scalar_prefetch = 0 : i64, scratch_operands = 0 : i64, tpu.core_type = #tpu.core_type<tc>, window_params = [{transform_indices = @transform_0, window_bounds = array<i64: 8, 256>}, {pipeline_mode = #tpu.pipeline_mode<synchronous>, transform_indices = @transform_1, window_bounds = array<i64: 256, 128>}, {pipeline_mode = #tpu.pipeline_mode<synchronous>, transform_indices = @transform_2, window_bounds = array<i64: 1, 128>}, {transform_indices = @transform_3, window_bounds = array<i64: 8, 128>}]} {
    %c0 = arith.constant 0 : index
    %c0_0 = arith.constant 0 : index
    %0 = vector.load %arg1[%c0, %c0_0] : memref<8x256xf32, #tpu.memory_space<vmem>>, vector<8x256xf32>
    %1 = arith.mulf %0, %0 : vector<8x256xf32>
    %cst = arith.constant dense<0.000000e+00> : vector<8xf32>
    %2 = vector.multi_reduction <add>, %1, %cst [1] : vector<8x256xf32> to vector<8xf32>
    %3 = vector.shape_cast %2 : vector<8xf32> to vector<8x1xf32>
    %4 = math.rsqrt %3 : vector<8x1xf32>
    %cst_1 = arith.constant 1.600000e+01 : f32
    %5 = vector.broadcast %cst_1 : f32 to vector<8x1xf32>
    %6 = arith.mulf %4, %5 : vector<8x1xf32>
    %c0_2 = arith.constant 0 : index
    %c0_3 = arith.constant 0 : index
    %7 = vector.load %arg2[%c0_2, %c0_3] : memref<256x128xf32, #tpu.memory_space<vmem>>, vector<256x128xf32>
    %cst_4 = arith.constant dense<0.000000e+00> : vector<8x128xf32>
    %8 = tpu.matmul %0, %7, %cst_4 {dimension_numbers = #tpu.dot_dimension_numbers<[1], [0], [0], [1], [0, 0, 1, 1], [], []>} : vector<8x256xf32>, vector<256x128xf32>, vector<8x128xf32> -> vector<8x128xf32>
    %9 = vector.broadcast %6 : vector<8x1xf32> to vector<8x128xf32>
    %10 = arith.mulf %8, %9 : vector<8x128xf32>
    %c0_5 = arith.constant 0 : index
    %c0_6 = arith.constant 0 : index
    %11 = vector.load %arg3[%c0_5, %c0_6] : memref<1x128xf32, #tpu.memory_space<vmem>>, vector<1x128xf32>
    %12 = vector.broadcast %11 : vector<1x128xf32> to vector<8x128xf32>
    %13 = arith.addf %10, %12 : vector<8x128xf32>
    %c0_7 = arith.constant 0 : index
    %c0_8 = arith.constant 0 : index
    %14 = vector.load %arg4[%c0_7, %c0_8] : memref<8x128xf32, #tpu.memory_space<vmem>>, vector<8x128xf32>
    tpu.vector_store %arg4[%c0_7, %c0_8], %13 {strides = array<i32>} : memref<8x128xf32, #tpu.memory_space<vmem>>, vector<8x128xf32>,
    return
  }
  func.func @transform_0(%arg0: i32) -> (i32, i32) {
    %c0_i32 = arith.constant 0 : i32
    %c0_i32_0 = arith.constant 0 : i32
    return %arg0, %c0_i32 : i32, i32
  }
  func.func @transform_1(%arg0: i32) -> (i32, i32) {
    %c0_i32 = arith.constant 0 : i32
    %c0_i32_0 = arith.constant 0 : i32
    %c0_i32_1 = arith.constant 0 : i32
    return %c0_i32, %c0_i32_0 : i32, i32
  }
  func.func @transform_2(%arg0: i32) -> (i32, i32) {
    %c0_i32 = arith.constant 0 : i32
    %c0_i32_0 = arith.constant 0 : i32
    %c0_i32_1 = arith.constant 0 : i32
    return %c0_i32, %c0_i32_0 : i32, i32
  }
  func.func @transform_3(%arg0: i32) -> (i32, i32) {
    %c0_i32 = arith.constant 0 : i32
    %c0_i32_0 = arith.constant 0 : i32
    return %arg0, %c0_i32 : i32, i32
  }
}

</mosaic_0001>

<bundles_post_ra>
// kernel: tpu_custom_call.1
= control target key start
LH: loop header
LB: loop body
LE: loop exit
PB: predicated region body
PF: predicated region fallthrough
CT: control target
= control target key end

     0   :  { %8 = vsyncpa [#allocation3], 0  ;;  %s324_s0 = inlined_call_operand.hbm [shape: f32[8,256], index: 0, kind: input, shape index: {}]   ;;  %s325_s1 = inlined_call_operand.hbm [shape: f32[256,128], index: 1, kind: input, shape index: {}]   ;;  %s326_s2 = inlined_call_operand.vmem [shape: f32[1,128], index: 2, kind: input, shape index: {}]   ;;  %s327_s3 = inlined_call_operand.hbm [shape: f32[8,128], index: 3, kind: output, shape index: {}]  }
   0x1   :  { %9 = vsyncpa [#allocation6], 0 }
   0x2   :  { %10 = vsyncpa [#allocation4], 0  ;;  %s287_s12 = smov [#allocation2]   ;;  %s288_s14 = smov [#allocation5]  }
   0x3   :  { %s17_s13 = sshll.u32 %s287_s12, 4  ;;  %s26_s15 = sshll.u32 %s288_s14, 4  ;;  %s18_s13 = int_to_ptr.vmem [resolvable:$true] %s17_s13  ;;  %s27_s15 = int_to_ptr.vmem [resolvable:$true] %s26_s15 }
   0x4   :  { %s229_s16 = scalar_lea.vmem %s18_s13, 256  ;;  %p234_p1 = scmp.lt.s32.totalorder %s18_s13, %s18_s13 }
   0x5   :  { %p230_p0 = scmp.ne.s32.totalorder %s18_s13, %s229_s16  ;;  %p235_p2 = scmp.lt.s32.totalorder %s229_s16, %s229_s16 }
   0x7   :  { %p236_p3 = por %p235_p2, %p234_p1 }
   0x9   :  { %p237_p4 = pnand %p236_p3, %p230_p0 }
   0xb   :  { %240 = shalt.err (!%p237_p4)
}
   0xc   :  { %20 = dma.hbm_to_vmem [thread:$0]  %s324_s0, 256, %s18_s13, [#allocation3]  }
   0xd   :  { %s249_s19 = scalar_lea.vmem %s27_s15, 4096  ;;  %p254_p6 = scmp.lt.s32.totalorder %s27_s15, %s27_s15 }
   0xe   :  { %p250_p5 = scmp.ne.s32.totalorder %s27_s15, %s249_s19  ;;  %p255_p7 = scmp.lt.s32.totalorder %s249_s19, %s249_s19 }
  0x10   :  { %p256_p8 = por %p255_p7, %p254_p6 }
  0x12   :  { %p257_p9 = pnand %p256_p8, %p250_p5 }
  0x14   :  { %260 = shalt.err (!%p257_p9)
}
  0x15   :  { %s289_s20 = smov 128   ;;  %s290_s21 = smov 8  }
  0x16   :  { %32 = dma.hbm_to_vmem [thread:$0]  %s325_s1, 4096, %s27_s15, [#allocation6], %s289_s20, %s289_s20, %s290_s21  }
  0x17   :  { %281 = dma.done.wait [#allocation3], 256  }
  0x18   :  { %282 = vsyncadd [#allocation3], 4294967040 }
  0x19   :  { %283 = dma.done.wait [#allocation6], 4096  }
  0x1a   :  { %284 = vsyncadd [#allocation6], 4294963200  ;;  %v81_v0 = vld [vmem:[#allocation5 + $0xf8] sm:$0xff]  ;;  %v80_v2 = vld [vmem:[#allocation5 + $0xf0] sm:$0xff]  ;;  %s291_s24 = smov [#allocation7]  }
  0x1b   :  { %v65_v1 = vld [vmem:[#allocation5 + $0x78] sm:$0xff]  ;;  %179 = vmatprep.subr.mxu0 %v81_v0  ;;  %v64_v3 = vld [vmem:[#allocation5 + $0x70] sm:$0xff]  ;;  %v79_v4 = vld [vmem:[#allocation5 + $0xe8] sm:$0xff]  ;;  %s168_s25 = sshll.u32 %s291_s24, 4  ;;  %s169_s25 = int_to_ptr.vmem [resolvable:$true] %s168_s25 }
  0x1c   :  { %180 = vmatpush3.msra.mxu0 %v65_v1  ;;  %v63_v5 = vld [vmem:[#allocation5 + $0x68] sm:$0xff]  ;;  %v78_v6 = vld [vmem:[#allocation5 + $0xe0] sm:$0xff]  ;;  %v77_v8 = vld [vmem:[#allocation5 + $0xd8] sm:$0xff]  ;;  %s261_s26 = scalar_lea.vmem %s169_s25, 128  ;;  %p266_p11 = scmp.lt.s32.totalorder %s169_s25, %s169_s25 }
  0x1d   :  { %181 = vmatprep.subr.mxu0 %v80_v2  ;;  %v62_v7 = vld [vmem:[#allocation5 + $0x60] sm:$0xff]  ;;  %v61_v9 = vld [vmem:[#allocation5 + $0x58] sm:$0xff]  ;;  %v76_v10 = vld [vmem:[#allocation5 + $0xd0] sm:$0xff]  ;;  %p262_p10 = scmp.ne.s32.totalorder %s169_s25, %s261_s26  ;;  %p267_p12 = scmp.lt.s32.totalorder %s261_s26, %s261_s26 }
  0x1e   :  { %182 = vmatpush3.msra.mxu0 %v64_v3  ;;  %v60_v11 = vld [vmem:[#allocation5 + $0x50] sm:$0xff]  ;;  %v75_v12 = vld [vmem:[#allocation5 + $0xc8] sm:$0xff]  ;;  %v42_v13 = vld [vmem:[#allocation2 + $0x8] sm:$0xff] }
  0x1f   :  { %183 = vmatprep.subr.mxu0 %v79_v4  ;;  %v59_v14 = vld [vmem:[#allocation5 + $0x48] sm:$0xff]  ;;  %v44_v15 = vmul.f32 %v42_v13, %v42_v13  ;;  %146 = vmatprep.mubr.f32.mxu0 %v42_v13  ;;  %v41_v16 = vld [vmem:[#allocation2] sm:$0xff]  ;;  %v74_v17 = vld [vmem:[#allocation5 + $0xc0] sm:$0xff]  ;;  %p268_p13 = por %p267_p12, %p266_p11 }
  0x20   :  { %184 = vmatpush3.msra.mxu0 %v63_v5  ;;  %v43_v18 = vmul.f32 %v41_v16, %v41_v16  ;;  %v58_v19 = vld [vmem:[#allocation5 + $0x40] sm:$0xff]  ;;  %v73_v20 = vld [vmem:[#allocation5 + $0xb8] sm:$0xff]  ;;  %v72_v23 = vld [vmem:[#allocation5 + $0xb0] sm:$0xff] }
  0x21   :  { %185 = vmatprep.subr.mxu0 %v78_v6  ;;  %v57_v22 = vld [vmem:[#allocation5 + $0x38] sm:$0xff]  ;;  %v56_v24 = vld [vmem:[#allocation5 + $0x30] sm:$0xff]  ;;  %v71_v25 = vld [vmem:[#allocation5 + $0xa8] sm:$0xff]  ;;  %p269_p0 = pnand %p268_p13, %p262_p10 }
  0x22   :  { %186 = vmatpush3.msra.mxu0 %v62_v7  ;;  %v45_v21 = vadd.f32 %v44_v15, %v43_v18  ;;  %v55_v26 = vld [vmem:[#allocation5 + $0x28] sm:$0xff]  ;;  %v70_v27 = vld [vmem:[#allocation5 + $0xa0] sm:$0xff]  ;;  %v69_v29 = vld [vmem:[#allocation5 + $0x98] sm:$0xff] }
  0x23   :  { %187 = vmatprep.subr.mxu0 %v77_v8  ;;  %v54_v28 = vld [vmem:[#allocation5 + $0x20] sm:$0xff]  ;;  %v53_v30 = vld [vmem:[#allocation5 + $0x18] sm:$0xff]  ;;  %v68_v31 = vld [vmem:[#allocation5 + $0x90] sm:$0xff] }
  0x24   :  { %188 = vmatpush3.msra.mxu0 %v61_v9  ;;  %46 = vadd.xlane.f32.xlu0 %v45_v21  ;;  %v52_v32 = vld [vmem:[#allocation5 + $0x10] sm:$0xff]  ;;  %v67_v33 = vld [vmem:[#allocation5 + $0x88] sm:$0xff]  ;;  %v66_v35 = vld [vmem:[#allocation5 + $0x80] sm:$0xff] }
  0x25   :  { %189 = vmatprep.subr.mxu0 %v76_v10  ;;  %v51_v34 = vld [vmem:[#allocation5 + $0x8] sm:$0xff]  ;;  %v50_v36 = vld [vmem:[#allocation5] sm:$0xff]  ;;  %v178_v43 = vld [vmem:[%s326_s2] ss:$0 sm:$0xff] }
  0x26   :  { %190 = vmatpush3.msra.mxu0 %v60_v11 }
  0x27   :  { %191 = vmatprep.subr.mxu0 %v75_v12 }
  0x28   :  { %192 = vmatpush3.msra.mxu0 %v59_v14 }
  0x29   :  { %193 = vmatprep.subr.mxu0 %v74_v17 }
  0x2a   :  { %194 = vmatpush3.msra.mxu0 %v58_v19 }
  0x2b   :  { %195 = vmatprep.subr.mxu0 %v73_v20 }
  0x2c   :  { %196 = vmatpush3.msra.mxu0 %v57_v22 }
  0x2d   :  { %197 = vmatprep.subr.mxu0 %v72_v23 }
  0x2e   :  { %198 = vmatpush3.msra.mxu0 %v56_v24 }
  0x2f   :  { %199 = vmatprep.subr.mxu0 %v71_v25 }
  0x30   :  { %200 = vmatpush3.msra.mxu0 %v55_v26 }
  0x31   :  { %201 = vmatprep.subr.mxu0 %v70_v27 }
  0x32   :  { %202 = vmatpush3.msra.mxu0 %v54_v28 }
  0x33   :  { %203 = vmatprep.subr.mxu0 %v69_v29 }
  0x34   :  { %204 = vmatpush3.msra.mxu0 %v53_v30 }
  0x35   :  { %205 = vmatprep.subr.mxu0 %v68_v31 }
  0x36   :  { %206 = vmatpush3.msra.mxu0 %v52_v32 }
  0x37   :  { %207 = vmatprep.subr.mxu0 %v67_v33 }
  0x38   :  { %208 = vmatpush3.msra.mxu0 %v51_v34 }
  0x39   :  { %209 = vmatprep.subr.mxu0 %v66_v35 }
  0x3a   :  { %210 = vmatpush3.msra.mxu0 %v50_v36 }
  0x3b   :  { %147 = vmatmul.mubr.f32.vlgmr.msra.gmra.mxu0 %v41_v16 }
  0xad   :  { %v47_v37 = vpop.xlane.xlu0 %46 }
  0xae   :  { %219 = vrsqrt.f32 %v47_v37 }
  0xbb   :  { %v220_v38 = vpop.eup %219 }
  0xbc   :  { %v49_v40 = vmul.f32 16.0, %v220_v38 }
  0xfb   :  { %v211_v39 = vpop.f32.mrf.mxu0 }
  0xfd   :  { %v212_v41 = vpop.f32.mrf.mxu0 }
  0xfe   :  { %v213_v42 = vadd.f32 %v212_v41, %v211_v39 }
 0x100   :  { %v152_v44 = vmul.f32 %v213_v42, %v49_v40 }
 0x102   :  { %v160_v45 = vadd.f32 %v178_v43, %v152_v44 }
 0x104   :  { %161 = vst [vmem:[#allocation7] sm:$0xff] %v160_v45 }
 0x105   :  { %272 = shalt.err (!%p269_p0)
}
 0x106   :  { %171 = dma.vmem_to_hbm [thread:$0]  %s169_s25, 128, %s327_s3, [#allocation4]  }
 0x107   :  { %285 = dma.done.wait [#allocation4], 128  }
 0x108   :  { %286 = vsyncadd [#allocation4], 4294967168 }
 0x109   :  { %175 = vsyncpa [#allocation3], 1 }
 0x10a   :  { %176 = vsyncpa [#allocation6], 1 }
 0x10b   :  { %177 = vsyncpa [#allocation4], 1 }

</bundles_post_ra>
